<compile_context>
chip_gen: v6e
topology: v6e:2x2x1
jax: 0.10.0
libtpu: 0.0.40
codegen_flags: <defaults>
</compile_context>

<pallas_src>
import functools

import numpy as np
import jax
import jax.numpy as jnp
from jax.experimental import pallas as pl
from jax.experimental.pallas import tpu as pltpu


def _round_up(x: int, m: int) -> int:
    return (x + m - 1) // m * m


def _vmem_capacity_bytes() -> int:
    """Per-core VMEM capacity; conservative 64 MiB (v7x) fallback."""
    try:
        cap = getattr(pltpu.get_tpu_info(), "vmem_capacity_bytes", None)
        if cap:
            return int(cap)
    except Exception:
        pass
    return 64 * 1024 * 1024


# ---------------- Pallas kernel (fully fused forward) ----------------

def _coupling_kernel(w_ref, b_ref, x_ref, o_ref, *, c1: int, c2: int, tb: int):
    # w_ref: (c1, c2)      pointwise-conv weight of F   (VMEM-resident)
    # b_ref: (c1, 1)       bias of F                    (VMEM-resident)
    # x_ref: (tb, C, TP)   lane-dense input slab, C = c1 + c2
    # o_ref: (tb, C, TP)   output slab, rows [0:c2) = y1, rows [c2:C) = y2
    w = w_ref[...]
    bias = b_ref[...]
    for bi in range(tb):                       # static unroll over batch block
        x1 = x_ref[bi, :c1, :]                 # (c1, TP)
        x2 = x_ref[bi, c1:, :]                 # (c2, TP)
        # F(x2) = relu(W @ x2 + b) -- tiny contraction, HBM-bound overall.
        f = jnp.dot(w, x2, preferred_element_type=jnp.float32)
        f = jnp.maximum(f + bias, 0.0)
        o_ref[bi, :c2, :] = x2                              # y1 = x2
        o_ref[bi, c2:, :] = (x1 + f).astype(o_ref.dtype)    # y2 = x1 + F(x2)


# ---------------- wrapper ----------------

def additive_coupling_forward(x: jnp.ndarray,
                              w: jnp.ndarray,
                              b: jnp.ndarray,
                              channel_split_pos: int,
                              *,
                              target_block_bytes: int = 1 << 20) -> jnp.ndarray:
    """Fused AdditiveCoupling.forward with F(x2) = relu(conv1x1(x2))."""
    N, C, H, W = x.shape
    c1 = channel_split_pos
    c2 = C - c1
    assert 0 < c1 < C
    assert w.shape == (c1, c2) and b.shape == (c1,)

    itemsize = x.dtype.itemsize
    # Sublane packing tile: 8 for f32, 16 for bf16, 32 for int8.  The channel
    # split / swapped concat is only relayout-free when both halves land on
    # sublane-tile boundaries.
    sublane = 8 * (4 // itemsize)
    assert c1 % sublane == 0 and c2 % sublane == 0, (
        f"channel_split_pos ({c1}) and C-split ({c2}) must be multiples of the "
        f"sublane packing tile ({sublane}) for dtype {x.dtype}")

    P = H * W
    xf = x.reshape(N, C, P)                  # free, contiguous lane-dense reshape
    b2 = b.reshape(c1, 1)

    # ---- per-generation VMEM budget: 2 in + 2 out double-buffered blocks ----
    vmem_cap = _vmem_capacity_bytes()
    budget = (vmem_cap * 5) // 8             # keep headroom below physical VMEM
    per_buf = budget // 4                    # one pipelined block's budget

    # Lane-dense TP: multiple of 128, as large as the budget / P allows.
    row_bytes = C * itemsize
    tp_cap = max(128, (per_buf // row_bytes) // 128 * 128)
    TP = min(_round_up(P, 128), tp_cap)
    grid_p = pl.cdiv(P, TP)                  # ragged tail masked by Pallas, no pad

    # Batch blocking so small-P layers still move ~target_block_bytes per step.
    blk_bytes_tb1 = C * TP * itemsize
    TB = max(1, min(N, 8,
                    target_block_bytes // blk_bytes_tb1,
                    per_buf // blk_bytes_tb1))
    grid_n = pl.cdiv(N, TB)

    # v7x has 2 TensorCores: guarantee >= 2 grid steps so neither sits idle.
    if grid_n * grid_p < 2:
        if N >= 2:
            TB = (N + 1) // 2
            grid_n = pl.cdiv(N, TB)
        elif TP > 128:
            TP = max(128, _round_up(pl.cdiv(P, 2), 128))
            grid_p = pl.cdiv(P, TP)

    block_bytes = TB * C * TP * itemsize
    wb_bytes = (c1 * c2 + c1) * w.dtype.itemsize
    vmem_limit = int(min(vmem_cap,
                         max(32 << 20, 4 * block_bytes + 2 * wb_bytes + (4 << 20))))

    flops = 2 * c1 * c2 * N * P + 2 * c1 * N * P
    bytes_accessed = 2 * N * C * P * itemsize + wb_bytes

    kernel = functools.partial(_coupling_kernel, c1=c1, c2=c2, tb=TB)

    out = pl.pallas_call(
        kernel,
        out_shape=jax.ShapeDtypeStruct((N, C, P), x.dtype),
        grid_spec=pltpu.PrefetchScalarGridSpec(
            num_scalar_prefetch=0,
            grid=(grid_n, grid_p),
            in_specs=[
                # weight & bias: constant index_map -> resident in VMEM
                pl.BlockSpec((c1, c2), lambda n, p: (0, 0)),
                pl.BlockSpec((c1, 1), lambda n, p: (0, 0)),
                # input slab: TB batch rows, all channels, TP-wide lane block
                pl.BlockSpec((TB, C, TP), lambda n, p: (n, 0, p)),
            ],
            out_specs=pl.BlockSpec((TB, C, TP), lambda n, p: (n, 0, p)),
        ),
        compiler_params=pltpu.CompilerParams(
            dimension_semantics=("parallel", "parallel"),
            vmem_limit_bytes=vmem_limit,
        ),
        cost_estimate=pl.CostEstimate(
            flops=int(flops),
            transcendentals=0,
            bytes_accessed=int(bytes_accessed),
        ),
    )(w, b2, xf)

    return out.reshape(N, C, H, W)           # free, contiguous reshape back


# ---------------- driver ----------------

if __name__ == "__main__":
    key = jax.random.PRNGKey(0)
    kx, kw, kb = jax.random.split(key, 3)

    N, C, H, W = 2, 16, 16, 16
    split = 8                                # channel_split_pos; C1 = C2 = 8
    x = jax.random.normal(kx, (N, C, H, W), dtype=jnp.float32)
    w = 0.5 * jax.random.normal(kw, (split, C - split), dtype=jnp.float32)
    b = 0.1 * jax.random.normal(kb, (split,), dtype=jnp.float32)

    y = additive_coupling_forward(x, w, b, split)
    y = jax.block_until_ready(y)
    assert y.shape == (N, C, H, W)

    # pure-JAX reference with identical semantics
    x1, x2 = x[:, :split], x[:, split:]
    f = jnp.einsum("oc,nchw->nohw", w, x2) + b[None, :, None, None]
    f = jnp.maximum(f, 0.0)
    ref = jnp.concatenate([x2, x1 + f], axis=1)
    ref = jax.block_until_ready(ref)

    if not np.allclose(np.asarray(y), np.asarray(ref), atol=1e-5, rtol=1e-5):
        raise AssertionError("Pallas kernel does not match AdditiveCoupling reference")

    print("KERNEL_OK")
</pallas_src>

<mosaic_0001>
module attributes {stable_mosaic.version = 11 : i64} {
  func.func @_coupling_kernel(%arg0: i32, %arg1: i32, %arg2: memref<8x8xf32, #tpu.memory_space<vmem>>, %arg3: memref<8x1xf32, #tpu.memory_space<vmem>>, %arg4: memref<1x16x256xf32, #tpu.memory_space<vmem>>, %arg5: memref<1x16x256xf32, #tpu.memory_space<vmem>>) attributes {dimension_semantics = [#tpu.dimension_semantics<parallel>, #tpu.dimension_semantics<parallel>], iteration_bounds = array<i64: 2, 1>, scalar_prefetch = 0 : i64, scratch_operands = 0 : i64, tpu.core_type = #tpu.core_type<tc>, window_params = [{pipeline_mode = #tpu.pipeline_mode<synchronous>, transform_indices = @transform_0, window_bounds = array<i64: 8, 8>}, {pipeline_mode = #tpu.pipeline_mode<synchronous>, transform_indices = @transform_1, window_bounds = array<i64: 8, 1>}, {transform_indices = @transform_2, window_bounds = array<i64: 1, 16, 256>}, {transform_indices = @transform_3, window_bounds = array<i64: 1, 16, 256>}]} {
    %c0 = arith.constant 0 : index
    %c0_0 = arith.constant 0 : index
    %0 = vector.load %arg2[%c0, %c0_0] : memref<8x8xf32, #tpu.memory_space<vmem>>, vector<8x8xf32>
    %c0_1 = arith.constant 0 : index
    %c0_2 = arith.constant 0 : index
    %1 = vector.load %arg3[%c0_1, %c0_2] : memref<8x1xf32, #tpu.memory_space<vmem>>, vector<8x1xf32>
    %c0_3 = arith.constant 0 : index
    %c0_4 = arith.constant 0 : index
    %c0_5 = arith.constant 0 : index
    %2 = vector.load %arg4[%c0_3, %c0_4, %c0_5] : memref<1x16x256xf32, #tpu.memory_space<vmem>>, vector<1x8x256xf32>
    %3 = vector.shape_cast %2 : vector<1x8x256xf32> to vector<8x256xf32>
    %c0_6 = arith.constant 0 : index
    %c8 = arith.constant 8 : index
    %c0_7 = arith.constant 0 : index
    %4 = vector.load %arg4[%c0_6, %c8, %c0_7] : memref<1x16x256xf32, #tpu.memory_space<vmem>>, vector<1x8x256xf32>
    %5 = vector.shape_cast %4 : vector<1x8x256xf32> to vector<8x256xf32>
    %cst = arith.constant dense<0.000000e+00> : vector<8x256xf32>
    %6 = tpu.matmul %0, %5, %cst {dimension_numbers = #tpu.dot_dimension_numbers<[1], [0], [0], [1], [0, 0, 1, 1], [], []>} : vector<8x8xf32>, vector<8x256xf32>, vector<8x256xf32> -> vector<8x256xf32>
    %7 = vector.broadcast %1 : vector<8x1xf32> to vector<8x256xf32>
    %8 = arith.addf %6, %7 : vector<8x256xf32>
    %cst_8 = arith.constant 0.000000e+00 : f32
    %9 = vector.broadcast %cst_8 : f32 to vector<8x256xf32>
    %10 = arith.maximumf %8, %9 : vector<8x256xf32>
    %c0_9 = arith.constant 0 : index
    %c0_10 = arith.constant 0 : index
    %c0_11 = arith.constant 0 : index
    %11 = vector.load %arg5[%c0_9, %c0_10, %c0_11] : memref<1x16x256xf32, #tpu.memory_space<vmem>>, vector<1x8x256xf32>
    %12 = vector.shape_cast %11 : vector<1x8x256xf32> to vector<8x256xf32>
    %13 = vector.shape_cast %5 : vector<8x256xf32> to vector<1x8x256xf32>
    tpu.vector_store %arg5[%c0_9, %c0_10, %c0_11], %13 {strides = array<i32>} : memref<1x16x256xf32, #tpu.memory_space<vmem>>, vector<1x8x256xf32>,
    %14 = arith.addf %3, %10 : vector<8x256xf32>
    %c0_12 = arith.constant 0 : index
    %c8_13 = arith.constant 8 : index
    %c0_14 = arith.constant 0 : index
    %15 = vector.load %arg5[%c0_12, %c8_13, %c0_14] : memref<1x16x256xf32, #tpu.memory_space<vmem>>, vector<1x8x256xf32>
    %16 = vector.shape_cast %15 : vector<1x8x256xf32> to vector<8x256xf32>
    %17 = vector.shape_cast %14 : vector<8x256xf32> to vector<1x8x256xf32>
    tpu.vector_store %arg5[%c0_12, %c8_13, %c0_14], %17 {strides = array<i32>} : memref<1x16x256xf32, #tpu.memory_space<vmem>>, vector<1x8x256xf32>,
    return
  }
  func.func @transform_0(%arg0: i32, %arg1: i32) -> (i32, i32) {
    %c0_i32 = arith.constant 0 : i32
    %c0_i32_0 = arith.constant 0 : i32
    %c0_i32_1 = arith.constant 0 : i32
    return %c0_i32, %c0_i32_0 : i32, i32
  }
  func.func @transform_1(%arg0: i32, %arg1: i32) -> (i32, i32) {
    %c0_i32 = arith.constant 0 : i32
    %c0_i32_0 = arith.constant 0 : i32
    %c0_i32_1 = arith.constant 0 : i32
    return %c0_i32, %c0_i32_0 : i32, i32
  }
  func.func @transform_2(%arg0: i32, %arg1: i32) -> (i32, i32, i32) {
    %c0_i32 = arith.constant 0 : i32
    %c0_i32_0 = arith.constant 0 : i32
    return %arg0, %c0_i32, %arg1 : i32, i32, i32
  }
  func.func @transform_3(%arg0: i32, %arg1: i32) -> (i32, i32, i32) {
    %c0_i32 = arith.constant 0 : i32
    %c0_i32_0 = arith.constant 0 : i32
    return %arg0, %c0_i32, %arg1 : i32, i32, i32
  }
}

</mosaic_0001>

<bundles_post_ra>
// kernel: tpu_custom_call.1
= control target key start
LH: loop header
LB: loop body
LE: loop exit
PB: predicated region body
PF: predicated region fallthrough
CT: control target
= control target key end

     0   :  { %8 = vsyncpa [#allocation3], 0  ;;  %s783_s0 = inlined_call_operand.vmem [shape: f32[8,8], index: 0, kind: input, shape index: {}]   ;;  %s784_s1 = inlined_call_operand.vmem [shape: f32[8,1], index: 1, kind: input, shape index: {}]   ;;  %s785_s2 = inlined_call_operand.hbm [shape: f32[2,16,256], index: 2, kind: input, shape index: {}]   ;;  %s786_s3 = inlined_call_operand.hbm [shape: f32[2,16,256], index: 3, kind: output, shape index: {}]  }
   0x1   :  { %10 = vsyncpa [#allocation3 + $0x1], 0 }
   0x2   :  { %11 = vsyncpa [#allocation4], 0 }
   0x3   :  { %13 = vsyncpa [#allocation4 + $0x1], 0  ;;  %s631_s12 = smov 0   ;;  %s633_s13 = smov 0  }
   0x4   :  { %s635_s14 = smov 0   ;;  %s637_s15 = smov 0  }
   0x5   :  { %s639_s16 = smov 0   ;;  %s641_s17 = smov 0  }
   0x6 LB: > { %s406_s18 = sadd.s32 4294967295, %s601_s17   ;;  %s407_s19 = sadd.s32 4294967294, %s601_s17   ;;  %s601_s17 = sphi %s641_s17, %s19_s17   ;;  %s597_s16 = sphi %s639_s16, %s797_s16   ;;  %s593_s15 = sphi %s637_s15, %s796_s15   ;;  %s589_s14 = sphi %s635_s14, %s795_s14   ;;  %s585_s13 = sphi %s633_s13, %s794_s13   ;;  %s581_s12 = sphi %s631_s12, %s793_s12  }
   0x7   : > { %s31_s20 = sadd.s32 1, %s597_s16  ;;  %s82_s21 = sadd.s32 1, %s589_s14 }
   0x8   : > { %p33_p0 = scmp.ge.s32.totalorder %s31_s20, 2  ;;  %p89_p1 = scmp.ne.s32.totalorder %s589_s14, %s585_s13 }
   0x9   : > { %p90_p2 = scmp.eq.s32.totalorder %s601_s17, 0  ;;  %p95_p3 = scmp.ne.s32.totalorder %s585_s13, %s581_s12 }
   0xa   : > { %s799_s20 = smov (%p33_p0, %s31_s20), 0  ;;  %p96_p5 = scmp.eq.s32.totalorder %s406_s18, 0 }
   0xb   : > { %p672_p4 = por %p90_p2, %p89_p1  ;;  %s77_s23 = ssub.s32 %s597_s16, %s799_s20 }
   0xc   : > { %p121_p6 = scmp.eq.s32.totalorder %s406_s18, 1  ;;  %p80_p7 = scmp.eq.s32.totalorder %s77_s23, 0 }
   0xd   : > { %p678_p8 = por %p96_p5, %p95_p3  ;;  %p127_p10 = scmp.eq.s32.totalorder %s407_s19, 1 }
   0xe   : > { %p682_p9 = por %p121_p6, %p89_p1  ;;  %p436_p13 = scmp.lt.s32.totalorder %s601_s17, 2 }
   0xf   : > { %s687_s26 = scalar_select %p80_p7, %s589_s14, %s82_s21  }
  0x10   : > { %p689_p11 = por %p127_p10, %p95_p3  ;;  %s153_s28 = sand.u32 1, %s589_s14  }
  0x11   : > { %s410_s29 = sshll.u32 %s153_s28, 5  ;;  %s422_s30 = sshll.u32 %s597_s16, 9 }
  0x12   : > { %s165_s6 = scalar_lea.hbm %s785_s2, %s422_s30  ;;  %s157_s7 = scalar_lea.vmem [#allocation2], %s410_s29 }
  0x13   : > { %s166_s8 = sshll.u32 %s157_s7, 4  ;;  %p702_p0 = pnand %p436_p13, %p672_p4  ;;  %s167_s8 = int_to_ptr.vmem [resolvable:$true] %s166_s8 }
  0x14   : > { %p413_p1 = scmp.ge.s32.totalorder %s601_s17, 1  ;;  %s154_s10 = scalar_lea.sflag [#allocation3], %s153_s28 }
  0x15   : > { %p495_p2 = pneg %p702_p0  ;;  %s506_s11 = scalar_lea.vmem %s167_s8, 512 }
  0x16   : > { %p507_p3 = scmp.ne.s32.totalorder %s167_s8, %s506_s11  ;;  %s603_s18 = smov [#allocation2]  }
  0x17   : > { %s511_s19 = sshll.u32 %s603_s18, 4  ;;  %s512_s19 = int_to_ptr.vmem [resolvable:$false] %s511_s19 }
  0x18   : > { %p509_p5 = pnand %p507_p3, %p495_p2  ;;  %s513_s21 = scalar_lea.vmem %s512_s19, 1024 }
  0x19   : > { %p514_p7 = scmp.lt.s32.totalorder %s167_s8, %s512_s19  ;;  %p515_p10 = scmp.lt.s32.totalorder %s513_s21, %s506_s11 }
  0x1a   : > { %p510_p6 = pneg %p509_p5 }
  0x1b   : > { %p516_p12 = por %p515_p10, %p514_p7 }
  0x1d   : > { %p517_p4 = pnand %p516_p12, %p510_p6 }
  0x1f   : > { %520 = shalt.err (!%p517_p4)
}
  0x20   : > { %s604_s22 = smov 256   ;;  %s605_s23 = smov 16  }
  0x21   : > { %431 = dma.hbm_to_vmem [thread:$0]  (!%p702_p0), %s165_s6, 512, %s167_s8, %s154_s10, %s604_s22, %s604_s22, %s605_s23  }
  0x22   : > { %p174_p13 = scmp.lt.s32.totalorder %s601_s17, 3 }
  0x24   : > { %p175_p2 = pnand %p413_p1, %p174_p13 }
  0x25   : > { %s715_s28 = sand.u32 (!%p175_p2), 1, %s585_s13  }
  0x26   : > { %178 = sbr.rel (%p175_p2) target bundleno = 263 (0x107), region = 32  ;;  %s414_s29 = sshll.u32 (!%p175_p2), %s715_s28, 5 }
  0x27   : > { %s181_s30 = scalar_lea.sflag (!%p175_p2), [#allocation3], %s715_s28  ;;  %s184_s4 = scalar_lea.vmem (!%p175_p2), [#allocation2], %s414_s29 }
  0x2b   : > { %572 = dma.done.wait (%p678_p8), %s181_s30, 512  }
  0x2c   : > { %574 = vsyncadd (%p678_p8), %s181_s30, 4294966784  ;;  %v606_v0 = vmov 0.0   ;;  %v607_v1 = vmov 0   ;;  %v214_v2 = vld [vmem:[%s184_s4 + $0x18] sm:$0xff]  ;;  %v213_v3 = vld [vmem:[%s184_s4 + $0x10] sm:$0xff]  ;;  %vm220_vm0 = vcmask 64512  }
  0x2d   : > { %288 = vmatprep.mubr.f32.mxu0 %v606_v0  ;;  %492 = vset.pattern.permute.xlu0 %v607_v1  ;;  %v209_v4 = vld [vmem:[%s783_s0] sm:$0xff]  ;;  %s206_s7 = scalar_lea.vmem [#allocation5], %s414_s29  ;;  %s423_s10 = sshll.u32 %s593_s15, 9  ;;  %v212_v13 = vld [vmem:[%s184_s4 + $0x8] sm:$0xff] }
  0x2e   : > { %254 = vmatprep.subr.mxu0 %v214_v2  ;;  %298 = vst [vmem:[%s206_s7 + $0x8] sm:$0xff] %v214_v2  ;;  %297 = vst [vmem:[%s206_s7] sm:$0xff] %v213_v3  ;;  %v210_v5 = vld [vmem:[%s784_s1] sm:$0xff]  ;;  %s319_s24 = sshll.u32 %s206_s7, 4  ;;  %s735_s19 = scalar_lea.hbm %s786_s3, %s423_s10  ;;  %s730_s24 = int_to_ptr.vmem [resolvable:$true] %s319_s24 }
  0x2f   : > { %255 = vmatpush1.msra.mxu0 %v213_v3  ;;  %217 = vperm.xlu0 %492, %v210_v5   ;;  %v211_v9 = vld [vmem:[%s184_s4] sm:$0xff]  ;;  %s304_s21 = scalar_lea.sflag [#allocation4], %s715_s28  ;;  %s521_s22 = scalar_lea.vmem %s730_s24, 512 }
  0x30   : > { %416 = vmatmul.mubr.msk.f32.vlgmr.msra.gmra.mxu0 %vm220_vm0, %v209_v4  ;;  %p522_p8 = scmp.ne.s32.totalorder %s730_s24, %s521_s22  ;;  %s608_s15 = smov [#allocation5]  }
  0x31   : > { %s525_s23 = sshll.u32 %s608_s15, 4  ;;  %s526_s23 = int_to_ptr.vmem [resolvable:$false] %s525_s23 }
  0x32   : > { %p523_p12 = pnand %p522_p8, %p682_p9  ;;  %s527_s29 = scalar_lea.vmem %s526_s23, 1024 }
  0x33   : > { %p528_p1 = scmp.lt.s32.totalorder %s730_s24, %s526_s23  ;;  %p529_p3 = scmp.lt.s32.totalorder %s527_s29, %s521_s22 }
  0x34   : > { %p524_p0 = pneg %p523_p12 }
  0x35   : > { %p530_p5 = por %p529_p3, %p528_p1 }
  0x37   : > { %p531_p6 = pnand %p530_p5, %p524_p0 }
  0xaa   : > { %v218_v6 = vpop.permute.xlu0 %217 }
  0xf0   : > { %v290_v7 = vpop.f32.mrf.mxu0 }
  0xf1   : > { %v291_v8 = vadd.f32 %v290_v7, %v218_v6 }
  0xf2   : > { %v292_v10 = vpop.f32.mrf.mxu0 }
  0xf3   : > { %v295_v11 = vmax.f32 %v291_v8, 0.0  ;;  %v293_v12 = vadd.f32 %v292_v10, %v218_v6 }
  0xf5   : > { %v299_v14 = vadd.f32 %v295_v11, %v211_v9  ;;  %v296_v15 = vmax.f32 %v293_v12, 0.0 }
  0xf7   : > { %301 = vst [vmem:[%s206_s7 + $0x10] sm:$0xff] %v299_v14  ;;  %v300_v16 = vadd.f32 %v296_v15, %v212_v13 }
  0xf9   : > { %302 = vst [vmem:[%s206_s7 + $0x18] sm:$0xff] %v300_v16 }
  0xfa   : > { %534 = shalt.err (!%p531_p6)
}
  0xfb   : > { %s535_s30 = scalar_lea.hbm %s735_s19, 512  ;;  %s539_s6 = scalar_lea.hbm %s786_s3, 1024 }
  0xfc   : > { %p536_p7 = scmp.ne.s32.totalorder %s735_s19, %s535_s30  ;;  %p540_p13 = scmp.lt.s32.totalorder %s735_s19, %s786_s3 }
  0xfd   : > { %p541_p2 = scmp.lt.s32.totalorder %s539_s6, %s535_s30 }
  0xfe   : > { %p537_p10 = pnand %p536_p7, %p682_p9 }
  0xff   : > { %p542_p8 = por %p541_p2, %p540_p13 }
 0x100   : > { %p538_p4 = pneg %p537_p10 }
 0x102   : > { %p543_p12 = pnand %p542_p8, %p538_p4 }
 0x104   : > { %546 = shalt.err (!%p543_p12)
}
 0x105   : > { %s609_s9 = smov 256   ;;  %s610_s10 = smov 16  }
 0x106   : > { %426 = dma.vmem_to_hbm [thread:$0]  (%p682_p9), %s730_s24, 512, %s735_s19, %s304_s21, %s609_s9, %s609_s9, %s610_s10  }
 0x107 PF: > { %s334_s11 = sand.u32 1, %s581_s12   ;;  %p792_p0 = scmp.ge.s32.totalorder %s601_s17, 2 }
 0x108   : > { %s335_s18 = scalar_lea.sflag [#allocation4], %s334_s11 }
 0x109   : > { %p433_p1 = pnand %p792_p0, %p689_p11 }
 0x10b   : > { %p434_p3 = pneg %p433_p1 }
 0x10d   : > { %576 = dma.done.wait (%p434_p3), %s335_s18, 512  }
 0x10e   : > { %578 = vsyncadd (%p434_p3), %s335_s18, 4294966784  ;;  %s19_s17 = sadd.s32 1, %s601_s17   ;;  %s793_s12 = smov %s585_s13 }
 0x10f   : > { %p16_p5 = scmp.ge.s32.totalorder %s19_s17, 4   ;;  %s794_s13 = smov %s589_s14 }
 0x110   : > { %s795_s14 = smov %s687_s26  ;;  %s796_s15 = smov %s597_s16 }
 0x111   : > { %s797_s16 = smov %s799_s20  ;;  %18 = sbr.rel (!%p16_p5) target bundleno = 6 (0x6), region = 77 }
 0x116   :  { %340 = vsyncpa [#allocation3], 1 }
 0x117   :  { %342 = vsyncpa [#allocation3 + $0x1], 1 }
 0x118   :  { %343 = vsyncpa [#allocation4], 1 }
 0x119   :  { %345 = vsyncpa [#allocation4 + $0x1], 1 }

</bundles_post_ra>
